<compile_context>
chip_gen: v6e
topology: v6e:2x2x1
jax: 0.10.0
libtpu: 0.0.40
codegen_flags: <defaults>
</compile_context>

<pallas_src>
import functools

import jax
import jax.numpy as jnp
from jax import lax
from jax.experimental import pallas as pl
from jax.experimental.pallas import tpu as pltpu


def _round_up(x, mult):
    return ((x + mult - 1) // mult) * mult


def _rbf_kernel_fulld(x_ref, xn_ref, y_ref, yn_ref, o_ref, *, neg_two_s2):
    """Full feature dim resident: one MXU contraction + sqrt/exp epilogue."""
    # Cross term on the MXU, contracting the last axis of both operands
    # (no explicit y.T -> no per-step XLU transpose of the streamed tile).
    # TODO(synk): verify via pl.lower_as_mlir on v5e that this contraction does not
    # emit a per-tile transpose; if it does, pre-transpose Y once in the wrapper.
    xy = lax.dot_general(
        x_ref[...], y_ref[...],
        dimension_numbers=(((1,), (1,)), ((), ())),
        preferred_element_type=jnp.float32,
    )  # (tn, tm) f32
    # scale^2 * ||x - y||^2 : the scale is already folded into the norms.
    d2 = xn_ref[...] + yn_ref[...] + neg_two_s2 * xy
    d2 = jnp.maximum(d2, 0.0)  # guard tiny negatives from cancellation
    o_ref[...] = jnp.exp(-jnp.sqrt(d2))


def _rbf_kernel_ksplit(x_ref, xn_ref, y_ref, yn_ref, o_ref, acc_ref, *, neg_two_s2):
    """d-chunked variant: accumulate x.y over the last ('arbitrary') grid axis."""
    k = pl.program_id(2)

    @pl.when(k == 0)
    def _():
        acc_ref[...] = jnp.zeros_like(acc_ref)

    acc_ref[...] += lax.dot_general(
        x_ref[...], y_ref[...],
        dimension_numbers=(((1,), (1,)), ((), ())),
        preferred_element_type=jnp.float32,
    )

    @pl.when(k == pl.num_programs(2) - 1)
    def _():
        d2 = xn_ref[...] + yn_ref[...] + neg_two_s2 * acc_ref[...]
        d2 = jnp.maximum(d2, 0.0)
        o_ref[...] = jnp.exp(-jnp.sqrt(d2))


def rbf_pallas(X, Y, sigma=1.0, *, dk=None):
    """exp(-cdist(X.view(n,-1), Y.view(m,-1)) / (s^2 * 2 * sigma^2)) -> (n, m) f32."""
    n, s, _ = X.shape
    m = Y.shape[0]
    d = s * s

    # bf16 pass-through halves the dominant DMA traffic; otherwise compute in f32.
    if X.dtype == jnp.bfloat16 and Y.dtype == jnp.bfloat16:
        cdtype = jnp.bfloat16
    else:
        cdtype = jnp.float32
    itemsize = 2 if cdtype == jnp.bfloat16 else 4

    Xf = X.reshape(n, d).astype(cdtype)
    Yf = Y.reshape(m, d).astype(cdtype)

    # exp(-(dist / s^2) / (2 sigma^2)) == exp(-sqrt(scale^2 * dist^2))
    scale = 1.0 / (float(s) ** 2 * 2.0 * float(sigma) ** 2)
    s2 = scale * scale
    neg_two_s2 = -2.0 * s2

    # Row norms computed once in f32, pre-scaled by scale^2 so the in-kernel
    # epilogue is exactly one sqrt + one exp per output element.
    xn = jnp.sum(Xf.astype(jnp.float32) ** 2, axis=-1, keepdims=True) * s2  # (n, 1)
    yn = (jnp.sum(Yf.astype(jnp.float32) ** 2, axis=-1) * s2)[None, :]      # (1, m)

    # Per-generation VMEM budget (v5e/v6e 128 MiB, v7x 64 MiB).
    try:
        vmem_cap = int(getattr(pltpu.get_tpu_info(), "vmem_capacity_bytes", 64 << 20))
    except Exception:  # conservative fallback
        vmem_cap = 64 << 20
    budget = int(vmem_cap * 0.6)

    # Streamed (Y) tile: lane-dense output columns; full m when m is small.
    tm = m if m <= 256 else 256

    # Resident (X) tile: as many rows as the budget allows -- re-streamed Y
    # traffic scales as 1/tn. All buffers double-buffered by default.
    # TODO(synk): on v7x, give the resident X/x-norm specs pipeline_mode=pl.Buffered(1)
    # and the streamed Y spec pl.Buffered(3) once VMEM gets tight.
    def full_d_bytes(tn_):
        return (2 * tn_ * d * itemsize      # X tile
                + 2 * tn_ * 4               # x norms
                + 2 * tm * d * itemsize     # Y tile
                + 2 * tm * 4                # y norms
                + 2 * tn_ * tm * 4)         # output tile

    tn = None
    for cand in ((n,) if n <= 2048 else ()) + (2048, 1024, 512, 256, 128):
        if full_d_bytes(cand) <= budget:
            tn = cand
            break

    if tn is not None and dk is None:
        # ---- Path A: full feature dim resident, 2-D grid ----
        vmem_limit = int(min(vmem_cap - (4 << 20),
                             max(full_d_bytes(tn) * 5 // 4, 8 << 20)))
        return pl.pallas_call(
            functools.partial(_rbf_kernel_fulld, neg_two_s2=neg_two_s2),
            out_shape=jax.ShapeDtypeStruct((n, m), jnp.float32),
            grid_spec=pltpu.PrefetchScalarGridSpec(
                num_scalar_prefetch=0,
                grid=(pl.cdiv(n, tn), pl.cdiv(m, tm)),
                in_specs=[
                    pl.BlockSpec((tn, d), lambda i, j: (i, 0)),   # X: resident
                    pl.BlockSpec((tn, 1), lambda i, j: (i, 0)),   # x norms: resident
                    pl.BlockSpec((tm, d), lambda i, j: (j, 0)),   # Y: streamed
                    pl.BlockSpec((1, tm), lambda i, j: (0, j)),   # y norms: streamed
                ],
                out_specs=pl.BlockSpec((tn, tm), lambda i, j: (i, j)),
            ),
            compiler_params=pltpu.CompilerParams(
                dimension_semantics=("parallel", "parallel"),
                vmem_limit_bytes=vmem_limit,
            ),
        )(Xf, xn, Yf, yn)

    # ---- Path B: feature dim too large for VMEM (or dk forced): k-split ----
    tn_b = n if n <= 512 else 512

    def ksplit_bytes(tn_, dk_):
        return (2 * tn_ * dk_ * itemsize + 2 * tn_ * 4
                + 2 * tm * dk_ * itemsize + 2 * tm * 4
                + 2 * tn_ * tm * 4
                + tn_ * tm * 4)             # f32 accumulator scratch (1 buffer)

    if dk is None:
        dk = 128
        for cand in (2048, 1024, 512, 256, 128):
            if ksplit_bytes(tn_b, cand) <= budget:
                dk = cand
                break

    if dk >= d:
        dk = d
        d_pad = d
    else:
        # Chunks along d must be 128-aligned; zero-pad the feature dim if it does
        # not divide evenly (zeros change neither the norms nor the dot products).
        d_pad = _round_up(d, dk)
        if d_pad != d:
            Xf = jnp.pad(Xf, ((0, 0), (0, d_pad - d)))
            Yf = jnp.pad(Yf, ((0, 0), (0, d_pad - d)))

    nk = d_pad // dk
    vmem_limit = int(min(vmem_cap - (4 << 20),
                         max(ksplit_bytes(tn_b, dk) * 5 // 4, 8 << 20)))
    return pl.pallas_call(
        functools.partial(_rbf_kernel_ksplit, neg_two_s2=neg_two_s2),
        out_shape=jax.ShapeDtypeStruct((n, m), jnp.float32),
        grid_spec=pltpu.PrefetchScalarGridSpec(
            num_scalar_prefetch=0,
            grid=(pl.cdiv(n, tn_b), pl.cdiv(m, tm), nk),
            in_specs=[
                pl.BlockSpec((tn_b, dk), lambda i, j, k: (i, k)),
                pl.BlockSpec((tn_b, 1), lambda i, j, k: (i, 0)),
                pl.BlockSpec((tm, dk), lambda i, j, k: (j, k)),
                pl.BlockSpec((1, tm), lambda i, j, k: (0, j)),
            ],
            out_specs=pl.BlockSpec((tn_b, tm), lambda i, j, k: (i, j)),
            scratch_shapes=[pltpu.VMEM((tn_b, tm), jnp.float32)],
        ),
        compiler_params=pltpu.CompilerParams(
            dimension_semantics=("parallel", "parallel", "arbitrary"),
            vmem_limit_bytes=vmem_limit,
        ),
    )(Xf, xn, Yf, yn)


def rbf_reference(X, Y, sigma=1.0):
    n, s, _ = X.shape
    m = Y.shape[0]
    Xf = X.reshape(n, s * s).astype(jnp.float32)
    Yf = Y.reshape(m, s * s).astype(jnp.float32)
    diff = Xf[:, None, :] - Yf[None, :, :]
    dist = jnp.sqrt(jnp.sum(diff * diff, axis=-1))
    return jnp.exp(-(dist / (s ** 2)) / (2.0 * sigma ** 2))


if __name__ == "__main__":
    sigma = 1.0  # RBF has no learnable parameters, only the sigma hyperparameter.

    key = jax.random.PRNGKey(0)
    kx, ky = jax.random.split(key)
    n, m, s = 8, 8, 16
    X = jax.random.normal(kx, (n, s, s), dtype=jnp.float32)
    Y = jax.random.normal(ky, (m, s, s), dtype=jnp.float32)

    ref = rbf_reference(X, Y, sigma=sigma)

    # Path A: full feature dim resident.
    out = jax.block_until_ready(rbf_pallas(X, Y, sigma=sigma))
    assert out.shape == (n, m)
    assert jnp.allclose(out, ref, atol=1e-5, rtol=1e-5), (
        f"full-d path max abs err = {jnp.max(jnp.abs(out - ref))}")

    # Path B: d-chunked accumulator (force a small dk to exercise the k-split).
    out_k = jax.block_until_ready(rbf_pallas(X, Y, sigma=sigma, dk=128))
    assert out_k.shape == (n, m)
    assert jnp.allclose(out_k, ref, atol=1e-5, rtol=1e-5), (
        f"k-split path max abs err = {jnp.max(jnp.abs(out_k - ref))}")

    print("KERNEL_OK")
</pallas_src>

<mosaic_0001>
module attributes {stable_mosaic.version = 11 : i64} {
  func.func @_rbf_kernel_fulld(%arg0: i32, %arg1: i32, %arg2: memref<8x256xf32, #tpu.memory_space<vmem>>, %arg3: memref<8x1xf32, #tpu.memory_space<vmem>>, %arg4: memref<8x256xf32, #tpu.memory_space<vmem>>, %arg5: memref<1x8xf32, #tpu.memory_space<vmem>>, %arg6: memref<8x8xf32, #tpu.memory_space<vmem>>) attributes {dimension_semantics = [#tpu.dimension_semantics<parallel>, #tpu.dimension_semantics<parallel>], iteration_bounds = array<i64: 1, 1>, scalar_prefetch = 0 : i64, scratch_operands = 0 : i64, tpu.core_type = #tpu.core_type<tc>, window_params = [{transform_indices = @transform_0, window_bounds = array<i64: 8, 256>}, {transform_indices = @transform_1, window_bounds = array<i64: 8, 1>}, {transform_indices = @transform_2, window_bounds = array<i64: 8, 256>}, {transform_indices = @transform_3, window_bounds = array<i64: 1, 8>}, {transform_indices = @transform_4, window_bounds = array<i64: 8, 8>}]} {
    %c0 = arith.constant 0 : index
    %c0_0 = arith.constant 0 : index
    %0 = vector.load %arg2[%c0, %c0_0] : memref<8x256xf32, #tpu.memory_space<vmem>>, vector<8x256xf32>
    %c0_1 = arith.constant 0 : index
    %c0_2 = arith.constant 0 : index
    %1 = vector.load %arg4[%c0_1, %c0_2] : memref<8x256xf32, #tpu.memory_space<vmem>>, vector<8x256xf32>
    %cst = arith.constant dense<0.000000e+00> : vector<8x8xf32>
    %2 = tpu.matmul %0, %1, %cst {dimension_numbers = #tpu.dot_dimension_numbers<[1], [1], [0], [0], [0, 0, 1, 0], [], []>} : vector<8x256xf32>, vector<8x256xf32>, vector<8x8xf32> -> vector<8x8xf32>
    %c0_3 = arith.constant 0 : index
    %c0_4 = arith.constant 0 : index
    %3 = vector.load %arg3[%c0_3, %c0_4] : memref<8x1xf32, #tpu.memory_space<vmem>>, vector<8x1xf32>
    %c0_5 = arith.constant 0 : index
    %c0_6 = arith.constant 0 : index
    %4 = vector.load %arg5[%c0_5, %c0_6] : memref<1x8xf32, #tpu.memory_space<vmem>>, vector<1x8xf32>
    %5 = vector.broadcast %3 : vector<8x1xf32> to vector<8x8xf32>
    %6 = vector.broadcast %4 : vector<1x8xf32> to vector<8x8xf32>
    %7 = arith.addf %5, %6 : vector<8x8xf32>
    %cst_7 = arith.constant -7.62939453E-6 : f32
    %8 = vector.broadcast %cst_7 : f32 to vector<8x8xf32>
    %9 = arith.mulf %8, %2 : vector<8x8xf32>
    %10 = arith.addf %7, %9 : vector<8x8xf32>
    %cst_8 = arith.constant 0.000000e+00 : f32
    %11 = vector.broadcast %cst_8 : f32 to vector<8x8xf32>
    %12 = arith.maximumf %10, %11 : vector<8x8xf32>
    %13 = math.sqrt %12 : vector<8x8xf32>
    %cst_9 = arith.constant 0.000000e+00 : f32
    %14 = vector.broadcast %cst_9 : f32 to vector<8x8xf32>
    %15 = arith.subf %14, %13 : vector<8x8xf32>
    %16 = math.exp %15 : vector<8x8xf32>
    %c0_10 = arith.constant 0 : index
    %c0_11 = arith.constant 0 : index
    %17 = vector.load %arg6[%c0_10, %c0_11] : memref<8x8xf32, #tpu.memory_space<vmem>>, vector<8x8xf32>
    tpu.vector_store %arg6[%c0_10, %c0_11], %16 {strides = array<i32>} : memref<8x8xf32, #tpu.memory_space<vmem>>, vector<8x8xf32>,
    return
  }
  func.func @transform_0(%arg0: i32, %arg1: i32) -> (i32, i32) {
    %c0_i32 = arith.constant 0 : i32
    %c0_i32_0 = arith.constant 0 : i32
    return %arg0, %c0_i32 : i32, i32
  }
  func.func @transform_1(%arg0: i32, %arg1: i32) -> (i32, i32) {
    %c0_i32 = arith.constant 0 : i32
    %c0_i32_0 = arith.constant 0 : i32
    return %arg0, %c0_i32 : i32, i32
  }
  func.func @transform_2(%arg0: i32, %arg1: i32) -> (i32, i32) {
    %c0_i32 = arith.constant 0 : i32
    %c0_i32_0 = arith.constant 0 : i32
    return %arg1, %c0_i32 : i32, i32
  }
  func.func @transform_3(%arg0: i32, %arg1: i32) -> (i32, i32) {
    %c0_i32 = arith.constant 0 : i32
    %c0_i32_0 = arith.constant 0 : i32
    return %c0_i32, %arg1 : i32, i32
  }
  func.func @transform_4(%arg0: i32, %arg1: i32) -> (i32, i32) {
    %c0_i32 = arith.constant 0 : i32
    return %arg0, %arg1 : i32, i32
  }
}

</mosaic_0001>

<bundles_post_ra>
// kernel: tpu_custom_call.1
= control target key start
LH: loop header
LB: loop body
LE: loop exit
PB: predicated region body
PF: predicated region fallthrough
CT: control target
= control target key end

     0   :  { %9 = vsyncpa [#allocation3], 0  ;;  %s281_s0 = inlined_call_operand.hbm [shape: f32[8,256], index: 0, kind: input, shape index: {}]   ;;  %s282_s1 = inlined_call_operand.vmem [shape: f32[8,1], index: 1, kind: input, shape index: {}]   ;;  %s283_s2 = inlined_call_operand.hbm [shape: f32[8,256], index: 2, kind: input, shape index: {}]   ;;  %s284_s3 = inlined_call_operand.vmem [shape: f32[1,8], index: 3, kind: input, shape index: {}]   ;;  %s285_s4 = inlined_call_operand.hbm [shape: f32[8,8], index: 4, kind: output, shape index: {}]  }
   0x1   :  { %10 = vsyncpa [#allocation6], 0 }
   0x2   :  { %11 = vsyncpa [#allocation4], 0  ;;  %s237_s15 = smov [#allocation2]   ;;  %s238_s17 = smov [#allocation5]  }
   0x3   :  { %s18_s16 = sshll.u32 %s237_s15, 4  ;;  %s30_s18 = sshll.u32 %s238_s17, 4  ;;  %s19_s16 = int_to_ptr.vmem [resolvable:$true] %s18_s16  ;;  %s31_s18 = int_to_ptr.vmem [resolvable:$true] %s30_s18 }
   0x4   :  { %s179_s19 = scalar_lea.vmem %s19_s16, 256  ;;  %p184_p1 = scmp.lt.s32.totalorder %s19_s16, %s19_s16 }
   0x5   :  { %p180_p0 = scmp.ne.s32.totalorder %s19_s16, %s179_s19  ;;  %p185_p2 = scmp.lt.s32.totalorder %s179_s19, %s179_s19 }
   0x7   :  { %p186_p3 = por %p185_p2, %p184_p1 }
   0x9   :  { %p187_p4 = pnand %p186_p3, %p180_p0 }
   0xb   :  { %190 = shalt.err (!%p187_p4)
}
   0xc   :  { %21 = dma.hbm_to_vmem [thread:$0]  %s281_s0, 256, %s19_s16, [#allocation3]  }
   0xd   :  { %s199_s22 = scalar_lea.vmem %s31_s18, 256  ;;  %p204_p6 = scmp.lt.s32.totalorder %s31_s18, %s31_s18 }
   0xe   :  { %p200_p5 = scmp.ne.s32.totalorder %s31_s18, %s199_s22  ;;  %p205_p7 = scmp.lt.s32.totalorder %s199_s22, %s199_s22 }
  0x10   :  { %p206_p8 = por %p205_p7, %p204_p6 }
  0x12   :  { %p207_p9 = pnand %p206_p8, %p200_p5 }
  0x14   :  { %210 = shalt.err (!%p207_p9)
}
  0x15   :  { %33 = dma.hbm_to_vmem [thread:$0]  %s283_s2, 256, %s31_s18, [#allocation6]  }
  0x16   :  { %231 = dma.done.wait [#allocation3], 256  }
  0x17   :  { %232 = vsyncadd [#allocation3], 4294967040 }
  0x18   :  { %233 = dma.done.wait [#allocation6], 256  }
  0x19   :  { %234 = vsyncadd [#allocation6], 4294967040  ;;  %v239_v0 = vmov 0   ;;  %v45_v1 = vld [vmem:[#allocation5 + $0x8] sm:$0xff]  ;;  %v44_v2 = vld [vmem:[#allocation5] sm:$0xff]  ;;  %vm143_vm2 = vcmask 64512  }
  0x1a   :  { %166 = vset.pattern.permute.xlu0 %v239_v0  ;;  %v43_v3 = vld [vmem:[#allocation2 + $0x8] sm:$0xff]  ;;  %76 = vmatprep.subr.mxu0 %v45_v1  ;;  %v116_v4 = vld [vmem:[%s282_s1] sm:$0xff]  ;;  %s240_s1 = smov [#allocation7]  }
  0x1b   :  { %110 = vmatprep.mubr.f32.mxu0 %v43_v3  ;;  %77 = vmatpush1.xpose.msra.mxu0 %v44_v2  ;;  %v42_v5 = vld [vmem:[#allocation2] sm:$0xff] }
  0x1c   :  { %120 = vperm.xlu0 %166, %v116_v4   ;;  %v161_v6 = vld [vmem:[%s284_s3] ss:$0 sm:$0xff]  ;;  %s151_s3 = sshll.u32 %s240_s1, 4  ;;  %s152_s3 = int_to_ptr.vmem [resolvable:$true] %s151_s3 }
  0x1d   :  { %s211_s27 = scalar_lea.vmem %s152_s3, 128  ;;  %p216_p11 = scmp.lt.s32.totalorder %s152_s3, %s152_s3 }
  0x1e   :  { %111 = vmatmul.mubr.f32.vlgmr.msra.gmra.mxu0 %v42_v5  ;;  %p212_p10 = scmp.ne.s32.totalorder %s152_s3, %s211_s27  ;;  %p217_p12 = scmp.lt.s32.totalorder %s211_s27, %s211_s27 }
  0x20   :  { %p218_p13 = por %p217_p12, %p216_p11 }
  0x22   :  { %p219_p0 = pnand %p218_p13, %p212_p10 }
  0x97   :  { %v121_v7 = vpop.permute.xlu0 %120 }
  0x98   :  { %v129_v8 = vadd.f32 %v161_v6, %v121_v7 }
  0xde   :  { %v112_v9 = vpop.f32.mrf.mxu0 }
  0xdf   :  { %v130_v10 = vmul.f32 -7.6293945e-06, %v112_v9 }
  0xe0   :  { %v114_v11 = vpop.f32.mrf.mxu0 }
  0xe1   :  { %v131_v12 = vadd.f32 %v130_v10, %v129_v8 }
  0xe3   :  { %v132_v13 = vmax.f32 %v131_v12, 0.0 }
  0xe5   :  { %167 = vrsqrt.f32 %v132_v13  ;;  %vm135_vm0 = vcmp.eq.f32.partialorder %v132_v13, inf  ;;  %v138_v16 = vand.u32 2147483648, %v132_v13  ;;  %vm137_vm1 = vcmp.eq.f32.partialorder %v132_v13, 0.0 }
  0xf2   :  { %v168_v14 = vpop.eup %167 }
  0xf3   :  { %v134_v15 = vmul.f32 %v168_v14, %v132_v13 }
  0xf5   :  { %v136_v17 = vsel %vm135_vm0, %v132_v13, %v134_v15 }
  0xf6   :  { %v139_v18 = vsel %vm137_vm1, %v138_v16, %v136_v17 }
  0xf7   :  { %v140_v19 = vsub.f32 0.0, %v139_v18 }
  0xf9   :  { %v141_v20 = vmul.f32 1.442695, %v140_v19 }
  0xfb   :  { %169 = vpow2.f32 %v141_v20 }
 0x108   :  { %v170_v21 = vpop.eup %169 }
 0x109   :  { %144 = vst.msk [vmem:[#allocation7] sm:$0xff] %vm143_vm2, %v170_v21 }
 0x10a   :  { %222 = shalt.err (!%p219_p0)
}
 0x10b   :  { %154 = dma.vmem_to_hbm [thread:$0]  %s152_s3, 128, %s285_s4, [#allocation4]  }
 0x10c   :  { %235 = dma.done.wait [#allocation4], 128  }
 0x10d   :  { %236 = vsyncadd [#allocation4], 4294967168 }
 0x10e   :  { %158 = vsyncpa [#allocation3], 1 }
 0x10f   :  { %159 = vsyncpa [#allocation6], 1 }
 0x110   :  { %160 = vsyncpa [#allocation4], 1 }

</bundles_post_ra>
